<compile_context>
chip_gen: v7x
topology: tpu7x:2x2x1
jax: 0.10.0
libtpu: 0.0.40
codegen_flags: <defaults>
</compile_context>

<pallas_src>
import functools

import jax
import jax.numpy as jnp
from jax.experimental import pallas as pl
from jax.experimental.pallas import tpu as pltpu

_LANES = 128  # lane width; multiple of 128 -> unmasked vst, zero-copy for n % 128 == 0


def _sigmoid_symmetric_kernel(x_ref, o_ref, *, scale, compute_dtype):
    # scale * 2 * sigmoid(x) - scale == scale * tanh(x / 2)
    x = x_ref[...].astype(compute_dtype)
    y = scale * jnp.tanh(0.5 * x)
    o_ref[...] = y.astype(o_ref.dtype)


def _sublane_multiple(dtype) -> int:
    # Sub-32-bit dtypes pack rows along sublanes; keep row tiles aligned to the
    # native packing so stores stay unmasked and no relayout is needed.
    itemsize = jnp.dtype(dtype).itemsize
    return {4: 8, 2: 16, 1: 32}.get(itemsize, 8)


def _device_kind() -> str:
    try:
        return jax.devices()[0].device_kind.lower()
    except Exception:  # pragma: no cover - defensive, keep trace-time safe
        return "unknown"


def _gen_params():
    """Per-generation (tile_bytes, vmem_limit_bytes, force_two_grid_steps)."""
    kind = _device_kind()
    if "7" in kind:  # v7x: 3.2 TB/s HBM, 64 MiB VMEM, 2 TCs/chip
        return (8 << 20), (48 << 20), True
    if "v6" in kind:  # v6e: 32 MiB scoped default comfortably fits 4 MiB tiles
        return (4 << 20), None, False
    # v5e and anything unknown: 2 MiB tiles fit the 16 MiB scoped default.
    return (2 << 20), None, False


def sigmoid_symmetric(x: jax.Array, scale: float = 1.0) -> jax.Array:
    # NOTE: scale is baked in as a trace-time constant (matches the nn.Module,
    # whose scale is a fixed Python attribute).
    orig_shape = x.shape
    orig_dtype = x.dtype
    n = x.size
    if n == 0:
        return x

    itemsize = jnp.dtype(orig_dtype).itemsize
    sub = _sublane_multiple(orig_dtype)
    target_bytes, vmem_limit, want_two_steps = _gen_params()
    kind = _device_kind()

    # bf16 compute is fine on v6e/v7x (bf16 VPU + EUP); keep f32 elsewhere.
    if orig_dtype == jnp.bfloat16 and ("v6" in kind or "7" in kind):
        compute_dtype = jnp.bfloat16
    else:
        compute_dtype = jnp.float32

    flat = jnp.ravel(x)
    n_bulk = (n // _LANES) * _LANES
    tail = n - n_bulk
    scale_f = float(scale)

    if n_bulk == 0:
        # Fewer than one lane-width of elements: plain jnp is strictly cheaper
        # than any kernel launch.
        y = (scale_f * jnp.tanh(0.5 * flat.astype(compute_dtype))).astype(orig_dtype)
        return y.reshape(orig_shape)

    rows = n_bulk // _LANES

    # Row tile sized for ~target_bytes per tile, rounded to the sublane packing
    # multiple; never larger than needed for the whole (sublane-rounded) slab.
    target_rows = max(sub, (target_bytes // (_LANES * itemsize)) // sub * sub)
    row_tile = min(target_rows, pl.cdiv(rows, sub) * sub)
    if want_two_steps and rows > sub and pl.cdiv(rows, row_tile) < 2:
        # v7x: make sure both TensorCores get a block on mid-sized tensors.
        row_tile = pl.cdiv(pl.cdiv(rows, 2), sub) * sub
    grid = (pl.cdiv(rows, row_tile),)  # ragged last block is masked by Pallas

    # Zero-copy reshape when aligned; otherwise only the aligned bulk is used.
    bulk = flat if tail == 0 else flat[:n_bulk]
    x2d = bulk.reshape(rows, _LANES)

    kernel = functools.partial(
        _sigmoid_symmetric_kernel, scale=scale_f, compute_dtype=compute_dtype
    )

    out2d = pl.pallas_call(
        kernel,
        out_shape=jax.ShapeDtypeStruct((rows, _LANES), orig_dtype),
        grid_spec=pl.GridSpec(
            grid=grid,
            in_specs=[pl.BlockSpec((row_tile, _LANES), lambda i: (i, 0))],
            out_specs=pl.BlockSpec((row_tile, _LANES), lambda i: (i, 0)),
        ),
        compiler_params=pltpu.CompilerParams(
            dimension_semantics=("parallel",),  # megacore sharding on v7x
            vmem_limit_bytes=vmem_limit,
        ),
        cost_estimate=pl.CostEstimate(
            flops=2 * n_bulk,
            transcendentals=n_bulk,
            bytes_accessed=2 * n_bulk * itemsize,
        ),
    )(x2d)

    out_flat = out2d.reshape(-1)
    if tail:
        # Tail-only handling: < 128 leftover elements via plain jnp.
        tail_out = (
            scale_f * jnp.tanh(0.5 * flat[n_bulk:].astype(compute_dtype))
        ).astype(orig_dtype)
        out_flat = jnp.concatenate([out_flat, tail_out])
    return out_flat.reshape(orig_shape)


def _reference(x, scale):
    return scale * 2.0 * jax.nn.sigmoid(x) - 1.0 * scale


if __name__ == "__main__":
    key = jax.random.PRNGKey(0)
    k1, k2, k3 = jax.random.split(key, 3)
    scale = 2.5

    # Small NCHW-like VAE activation tensor (2048 elems -> zero-copy path).
    x1 = jax.random.normal(k1, (2, 4, 16, 16), dtype=jnp.float32) * 3.0
    y1 = jax.block_until_ready(sigmoid_symmetric(x1, scale=scale))
    assert y1.shape == x1.shape and y1.dtype == x1.dtype
    assert jnp.allclose(y1, _reference(x1, scale), atol=1e-5, rtol=1e-5)

    # Larger lane-aligned tensor (multi-row slab, still zero-copy).
    x2 = jax.random.normal(k2, (2, 4, 32, 64), dtype=jnp.float32) * 3.0
    y2 = jax.block_until_ready(sigmoid_symmetric(x2, scale=scale))
    assert y2.shape == x2.shape and y2.dtype == x2.dtype
    assert jnp.allclose(y2, _reference(x2, scale), atol=1e-5, rtol=1e-5)

    # Ragged size (258 elems) -> aligned bulk through the kernel + jnp tail.
    x3 = jax.random.normal(k3, (2, 3, 43), dtype=jnp.float32) * 3.0
    y3 = jax.block_until_ready(sigmoid_symmetric(x3, scale=scale))
    assert y3.shape == x3.shape and y3.dtype == x3.dtype
    assert jnp.allclose(y3, _reference(x3, scale), atol=1e-5, rtol=1e-5)

    print("KERNEL_OK")
</pallas_src>

<mosaic_0001>
module attributes {stable_mosaic.version = 11 : i64} {
  func.func @_sigmoid_symmetric_kernel(%arg0: i32, %arg1: memref<16x128xf32, #tpu.memory_space<vmem>>, %arg2: memref<16x128xf32, #tpu.memory_space<vmem>>) attributes {dimension_semantics = [#tpu.dimension_semantics<parallel>], iteration_bounds = array<i64: 1>, scalar_prefetch = 0 : i64, scratch_operands = 0 : i64, tpu.core_type = #tpu.core_type<tc>, window_params = [{transform_indices = @transform_0, window_bounds = array<i64: 16, 128>}, {transform_indices = @transform_1, window_bounds = array<i64: 16, 128>}]} {
    %c0 = arith.constant 0 : index
    %c0_0 = arith.constant 0 : index
    %0 = vector.load %arg1[%c0, %c0_0] : memref<16x128xf32, #tpu.memory_space<vmem>>, vector<16x128xf32>
    %cst = arith.constant 5.000000e-01 : f32
    %1 = vector.broadcast %cst : f32 to vector<16x128xf32>
    %2 = arith.mulf %1, %0 : vector<16x128xf32>
    %3 = math.tanh %2 : vector<16x128xf32>
    %cst_1 = arith.constant 2.500000e+00 : f32
    %4 = vector.broadcast %cst_1 : f32 to vector<16x128xf32>
    %5 = arith.mulf %4, %3 : vector<16x128xf32>
    %c0_2 = arith.constant 0 : index
    %c0_3 = arith.constant 0 : index
    %6 = vector.load %arg2[%c0_2, %c0_3] : memref<16x128xf32, #tpu.memory_space<vmem>>, vector<16x128xf32>
    tpu.vector_store %arg2[%c0_2, %c0_3], %5 {strides = array<i32>} : memref<16x128xf32, #tpu.memory_space<vmem>>, vector<16x128xf32>,
    return
  }
  func.func @transform_0(%arg0: i32) -> (i32, i32) {
    %c0_i32 = arith.constant 0 : i32
    %c0_i32_0 = arith.constant 0 : i32
    return %arg0, %c0_i32 : i32, i32
  }
  func.func @transform_1(%arg0: i32) -> (i32, i32) {
    %c0_i32 = arith.constant 0 : i32
    %c0_i32_0 = arith.constant 0 : i32
    return %arg0, %c0_i32 : i32, i32
  }
}

</mosaic_0001>

<bundles_post_ra>
// kernel: tpu_custom_call.1
= control target key start
LH: loop header
LB: loop body
LE: loop exit
PB: predicated region body
PF: predicated region fallthrough
CT: control target
= control target key end

     0   :  { %6 = vsyncpa [#allocation3], 0  ;;  %s150_s0 = inlined_call_operand.hbm [shape: f32[16,128], index: 0, kind: input, shape index: {}]   ;;  %s151_s1 = inlined_call_operand.hbm [shape: f32[16,128], index: 1, kind: output, shape index: {}]  }
   0x1   :  { %7 = vsyncpa [#allocation4], 0  ;;  %s106_s6 = smov [#allocation2]   ;;  %s58_s10 = scalar_lea.hbm %s150_s0, 256 }
   0x2   :  { %s13_s7 = sshll.u32 %s106_s6, 4  ;;  %p59_p0 = scmp.ne.s32.totalorder %s150_s0, %s58_s10  ;;  %s14_s7 = int_to_ptr.vmem [resolvable:$true] %s13_s7 }
   0x3   :  { %p62_p1 = scmp.lt.u32.totalorder %s58_s10, %s150_s0 }
   0x5   :  { %p64_p2 = pnand %p62_p1, %p59_p0 }
   0x7   :  { %67 = shalt.err (!%p64_p2)
}
   0x8   :  { %s68_s15 = scalar_lea.vmem %s14_s7, 256  ;;  %p73_p4 = scmp.lt.s32.totalorder %s14_s7, %s14_s7 }
   0x9   :  { %p69_p3 = scmp.ne.s32.totalorder %s14_s7, %s68_s15  ;;  %p74_p5 = scmp.lt.s32.totalorder %s68_s15, %s68_s15 }
   0xb   :  { %p75_p6 = por %p74_p5, %p73_p4 }
   0xd   :  { %p76_p7 = pnand %p75_p6, %p69_p3 }
   0xf   :  { %79 = shalt.err (!%p76_p7)
}
  0x10   :  { %s107_s16 = smov 128   ;;  %s108_s17 = smov 8  }
  0x11   :  { %19 = dma.hbm_to_vmem [thread:$0]  %s150_s0, 256, %s14_s7, [#allocation3], %s107_s16, %s107_s16, %s108_s17  }
  0x12   :  { %102 = dma.done.wait [#allocation3], 256  }
  0x13   :  { %103 = vsyncadd [#allocation3], 4294967040  ;;  %v23_v0 = vld [vmem:[#allocation2] sm:$0xff]  ;;  %v24_v1 = vld [vmem:[#allocation2 + $0x8] sm:$0xff]  ;;  %s109_s20 = smov [#allocation5]  }
  0x14   :  { %v25_v2 = vmul.f32 0.5, %v23_v0  ;;  %v26_v3 = vmul.f32 0.5, %v24_v1  ;;  %s38_s21 = sshll.u32 %s109_s20, 4  ;;  %s39_s21 = int_to_ptr.vmem [resolvable:$true] %s38_s21 }
  0x15   :  { %s80_s22 = scalar_lea.vmem %s39_s21, 256  ;;  %p85_p9 = scmp.lt.s32.totalorder %s39_s21, %s39_s21 }
  0x16   :  { %54 = vtanh.f32 %v25_v2  ;;  %p81_p8 = scmp.ne.s32.totalorder %s39_s21, %s80_s22  ;;  %p86_p10 = scmp.lt.s32.totalorder %s80_s22, %s80_s22 }
  0x17   :  { %56 = vtanh.f32 %v26_v3 }
  0x18   :  { %p87_p11 = por %p86_p10, %p85_p9 }
  0x1a   :  { %p88_p12 = pnand %p87_p11, %p81_p8 }
  0x20   :  { %v55_v4 = vpop.eup %54 }
  0x21   :  { %v57_v5 = vpop.eup %56  ;;  %v29_v6 = vmul.f32 2.5, %v55_v4 }
  0x22   :  { %v30_v7 = vmul.f32 2.5, %v57_v5 }
  0x23   :  { %31 = vst [vmem:[#allocation5] sm:$0xff] %v29_v6 }
  0x24   :  { %32 = vst [vmem:[#allocation5 + $0x8] sm:$0xff] %v30_v7 }
  0x25   :  { %91 = shalt.err (!%p88_p12)
}
  0x26   :  { %s92_s24 = scalar_lea.hbm %s151_s1, 256 }
  0x27   :  { %p93_p13 = scmp.ne.s32.totalorder %s151_s1, %s92_s24  ;;  %p96_p0 = scmp.lt.u32.totalorder %s92_s24, %s151_s1 }
  0x29   :  { %p98_p1 = pnand %p96_p0, %p93_p13 }
  0x2b   :  { %101 = shalt.err (!%p98_p1)
}
  0x2c   :  { %44 = dma.vmem_to_hbm [thread:$0]  %s39_s21, 256, %s151_s1, [#allocation4], %s107_s16, %s107_s16, %s108_s17  }
  0x2d   :  { %104 = dma.done.wait [#allocation4], 256  }
  0x2e   :  { %105 = vsyncadd [#allocation4], 4294967040 }
  0x2f   :  { %48 = vsyncpa [#allocation3], 1 }
  0x30   :  { %49 = vsyncpa [#allocation4], 1 }

</bundles_post_ra>
